<compile_context>
chip_gen: v6e
topology: v6e:2x2x1
jax: 0.10.0
libtpu: 0.0.40
codegen_flags: <defaults>
</compile_context>

<pallas_src>
import functools

import jax
import jax.numpy as jnp
import numpy as np
from jax.experimental import pallas as pl
from jax.experimental.pallas import tpu as pltpu

_LANE_PAD = 128  # left zero margin added to the flattened spatial axis in the wrapper


def _downconv_kernel(x_ref, wf_ref, w2_ref, vec_ref, mask_ref,
                     skip_ref, z_ref, *, H, W, B, ML):
    """B images per grid step, channel-major, flattened spatial axis on lanes.

    x_ref   : (B, Cin_p, ML + H*W + MR)  zero-margined, channel-padded, flattened input
    wf_ref  : (2*Cout, 9*Cin_p)          [conv1 * s1 ; 1x1 residual in center tap] weights
    w2_ref  : (Cout, 9*Cout)             conv2 weights (BN2 scale folded), tap-major
    vec_ref : (Cout, 3)                  [t1, t2, br] folded BN shifts + residual bias
    mask_ref: (1, Q)                     canvas-interior validity mask (0/1), grid-invariant
    skip_ref: (B, Cout, Pp)              skip on full-width rows (cols >= W-2 junk; wrapper crops)
    z_ref   : (B, Cout, Lp)              2x2-window maxima (stride-2 pick done by wrapper)
    """
    H1 = H - 2
    P = H1 * W                       # useful flattened (H1, W) extent
    Pp = skip_ref.shape[2]           # P rounded up to a multiple of 128
    Lp = z_ref.shape[2]
    L = P - W - 1                    # number of 2x2 window-max positions computed
    Q = mask_ref.shape[1]            # canvas extent = 2*W + 2 + Pp
    Cout = w2_ref.shape[0]
    f32 = jnp.float32

    t1 = vec_ref[:, 0:1]
    t2 = vec_ref[:, 1:2]
    br = vec_ref[:, 2:3]
    mask = mask_ref[...]             # (1, Q) 0/1

    def im2col(src, base, length):
        # tap-major / channel-minor slab; pieces are 8-sublane aligned (Cin_p, Cout mult of 8)
        return jnp.concatenate(
            [src[:, base + kh * W + kw: base + kh * W + kw + length]
             for kh in range(3) for kw in range(3)], axis=0)

    # ---- Conv1 (3x3 valid, BN1 scale folded) + fused 1x1 residual: ONE matmul over the
    #      concatenated canvases of the B images. Conv1 is evaluated directly in the
    #      zero-padded ("canvas") coordinates of conv2 -> no pad scratch / reload.
    slab1 = jnp.concatenate(
        [im2col(x_ref[b], ML - (W + 1), Q) for b in range(B)], axis=1)    # (9*Cin_p, B*Q)
    y_all = jnp.dot(wf_ref[...], slab1, preferred_element_type=f32)       # (2*Cout, B*Q)

    canvases = []
    for b in range(B):
        y1 = y_all[0:Cout, b * Q:(b + 1) * Q]                             # s1*conv1 (folded)
        canvases.append(jnp.maximum(y1 + t1, 0.0) * mask)                 # BN1 shift+ReLU, pad=0
    # TODO(synk): Dropout(0.4) identity (eval mode).

    # ---- Conv2 (3x3, padding=1, BN2 scale folded) as one matmul over all canvases ----
    slab2 = jnp.concatenate(
        [im2col(c, 0, Pp) for c in canvases], axis=1)                     # (9*Cout, B*Pp)
    y2_all = jnp.dot(w2_ref[...], slab2, preferred_element_type=f32)      # (Cout, B*Pp)

    for b in range(B):
        # 1x1 residual = center-tap rows of the fused matmul (canvas col q reads x[q]).
        res = y_all[Cout:2 * Cout, b * Q: b * Q + Pp]                     # (Cout, Pp)
        skip = jnp.maximum(y2_all[:, b * Pp:(b + 1) * Pp] + t2, 0.0) + res + br
        skip_ref[b] = skip.astype(skip_ref.dtype)                         # lane-dense store

        # MaxPool2d(2): 2x2 window maxima via lane-shifted slices (no reshapes).
        pool = jnp.maximum(
            jnp.maximum(skip[:, 0:L], skip[:, 1:L + 1]),
            jnp.maximum(skip[:, W:W + L], skip[:, W + 1:W + 1 + L]))      # (Cout, L)
        if Lp > L:                                                        # pad -> dense store
            pool = jnp.concatenate(
                [pool, jnp.zeros((Cout, Lp - L), f32)], axis=1)
        z_ref[b] = pool.astype(z_ref.dtype)


def _round_up(v, m):
    return -(-v // m) * m


@jax.jit
def downconv_forward(x_nchw, params):
    """DownConv.forward (eval mode). Input NCHW, returns (z, skip) in NCHW."""
    eps = 1e-5
    N, Cin, H, W = x_nchw.shape
    Cout = params["w1"].shape[0]
    H1, W1 = H - 2, W - 2
    H2, W2 = H1 // 2, W1 // 2
    P = H1 * W
    Pp = _round_up(P, 128)                 # lane-dense skip store width
    L = P - W - 1
    Lp = _round_up(L, 128)                 # lane-dense pool store width
    Q = 2 * W + 2 + Pp                     # canvas width (covers all conv2 tap slices)
    ML = _LANE_PAD
    MR = _round_up(max(1, Q + W + 1 - H * W), 128)
    Cin_p = _round_up(Cin, 8)
    assert Cout % 8 == 0, "kernel assumes Cout is a multiple of 8"
    assert ML >= W + 1
    f32 = jnp.float32

    # Images per grid step: wider matmul N on single-TC chips, but keep >=2 grid points so
    # both v7x TensorCores get work.  (B=1 at this test size.)
    B = 1 if N < 4 else 2
    assert N % B == 0

    # Layout plumbing only: channel-major, flattened spatial axis, zero lane margins.
    x = x_nchw.astype(f32).reshape(N, Cin, H * W)
    x = jnp.pad(x, ((0, 0), (0, Cin_p - Cin), (ML, MR)))       # (N, Cin_p, ML+H*W+MR)

    def fold_bn(gamma, beta, mean, var, conv_bias):
        s = gamma / jnp.sqrt(var + eps)
        return s, beta + (conv_bias - mean) * s

    s1, t1 = fold_bn(params["g1"], params["be1"], params["m1"], params["v1"], params["b1"])
    s2, t2 = fold_bn(params["g2"], params["be2"], params["m2"], params["v2"], params["b2"])

    def prep3x3(w_oihw, cin_p, scale):
        o, ci = w_oihw.shape[0], w_oihw.shape[1]
        w = w_oihw.astype(f32) * scale[:, None, None, None]    # fold BN scale into weights
        w = jnp.pad(w, ((0, 0), (0, cin_p - ci), (0, 0), (0, 0)))
        # (o, c, kh, kw) -> (o, kh, kw, c) -> (o, 9*cin_p): matches the kernel's slabs.
        return jnp.transpose(w, (0, 2, 3, 1)).reshape(o, 9 * cin_p)

    w1r = prep3x3(params["w1"], Cin_p, s1)                     # (Cout, 9*Cin_p)
    w2r = prep3x3(params["w2"], Cout, s2)                      # (Cout, 9*Cout)

    # 1x1 residual weights placed in the center-tap (kh=1,kw=1) columns, stacked under conv1.
    wr = jnp.pad(params["wr"][:, :, 0, 0].astype(f32), ((0, 0), (0, Cin_p - Cin)))
    wr_rows = jnp.zeros((Cout, 9 * Cin_p), f32).at[:, 4 * Cin_p:5 * Cin_p].set(wr)
    wf = jnp.concatenate([w1r, wr_rows], axis=0)               # (2*Cout, 9*Cin_p)

    vecs = jnp.stack([t1, t2, params["br"].astype(f32)], axis=1)   # (Cout, 3)

    # Grid-invariant canvas-interior mask (built once on host, tiny constant input).
    q = np.arange(Q)
    valid = (q >= W + 1) & (q < W + 1 + P) & (q % W >= 1) & (q % W <= W - 2)
    mask = jnp.asarray(valid.astype(np.float32)[None, :])      # (1, Q)

    Xw = x.shape[2]
    kernel = functools.partial(_downconv_kernel, H=H, W=W, B=B, ML=ML)

    skip_flat, z_flat = pl.pallas_call(
        kernel,
        out_shape=(jax.ShapeDtypeStruct((N, Cout, Pp), f32),
                   jax.ShapeDtypeStruct((N, Cout, Lp), f32)),
        grid_spec=pltpu.PrefetchScalarGridSpec(
            num_scalar_prefetch=0,
            grid=(N // B,),
            in_specs=[
                pl.BlockSpec((B, Cin_p, Xw), lambda n: (n, 0, 0)),
                pl.BlockSpec((2 * Cout, 9 * Cin_p), lambda n: (0, 0)),
                pl.BlockSpec((Cout, 9 * Cout), lambda n: (0, 0)),
                pl.BlockSpec((Cout, 3), lambda n: (0, 0)),
                pl.BlockSpec((1, Q), lambda n: (0, 0)),
            ],
            out_specs=(pl.BlockSpec((B, Cout, Pp), lambda n: (n, 0, 0)),
                       pl.BlockSpec((B, Cout, Lp), lambda n: (n, 0, 0))),
        ),
        compiler_params=pltpu.CompilerParams(
            dimension_semantics=("parallel",)),   # disjoint per-step outputs -> megacore
    )(x, wf, w2r, vecs, mask)

    # Layout plumbing only: drop padded/junk columns; pick stride-2 pool positions.
    skip = skip_flat[:, :, :P].reshape(N, Cout, H1, W)[:, :, :, :W1]
    z_win = jnp.pad(z_flat[:, :, :L], ((0, 0), (0, 0), (0, P - L))).reshape(N, Cout, H1, W)
    z = z_win[:, :, 0:2 * H2:2, 0:2 * W2:2]
    return z, skip


def _ref_forward(x_nchw, p):
    """Pure-JAX reference (lax.conv) of DownConv.forward in eval mode."""
    eps = 1e-5
    x = jnp.transpose(x_nchw, (0, 2, 3, 1))

    def conv(inp, w_oihw, b, padding):
        w = jnp.transpose(w_oihw, (2, 3, 1, 0))
        y = jax.lax.conv_general_dilated(
            inp, w, (1, 1), padding,
            dimension_numbers=("NHWC", "HWIO", "NHWC"),
            precision=jax.lax.Precision.HIGHEST)
        return y + b

    y = conv(x, p["w1"], p["b1"], "VALID")
    y = (y - p["m1"]) / jnp.sqrt(p["v1"] + eps) * p["g1"] + p["be1"]
    y = jnp.maximum(y, 0.0)
    y = conv(y, p["w2"], p["b2"], [(1, 1), (1, 1)])
    y = (y - p["m2"]) / jnp.sqrt(p["v2"] + eps) * p["g2"] + p["be2"]
    y = jnp.maximum(y, 0.0)
    res = conv(x, p["wr"], p["br"], "VALID")
    H1, W1 = y.shape[1], y.shape[2]
    skip = y + res[:, :H1, :W1, :]
    N, _, _, C = skip.shape
    H2, W2 = H1 // 2, W1 // 2
    z = skip[:, :2 * H2, :2 * W2, :].reshape(N, H2, 2, W2, 2, C).max(axis=(2, 4))
    return jnp.transpose(z, (0, 3, 1, 2)), jnp.transpose(skip, (0, 3, 1, 2))


def _make_params(key, in_chan, out_chan):
    ks = jax.random.split(key, 6)
    f32 = jnp.float32
    ar = jnp.arange(out_chan, dtype=f32)
    return dict(
        w1=jax.random.normal(ks[0], (out_chan, in_chan, 3, 3), f32) * 0.2,
        b1=jax.random.normal(ks[1], (out_chan,), f32) * 0.1,
        g1=1.0 + 0.10 * ar, be1=0.05 * ar, m1=0.02 * ar, v1=1.0 + 0.05 * ar,
        w2=jax.random.normal(ks[2], (out_chan, out_chan, 3, 3), f32) * 0.2,
        b2=jax.random.normal(ks[3], (out_chan,), f32) * 0.1,
        g2=1.0 - 0.03 * ar, be2=-0.04 * ar, m2=0.01 * ar, v2=1.0 + 0.10 * ar,
        wr=jax.random.normal(ks[4], (out_chan, in_chan, 1, 1), f32) * 0.2,
        br=jax.random.normal(ks[5], (out_chan,), f32) * 0.1,
    )


if __name__ == "__main__":
    key = jax.random.PRNGKey(0)
    k_x, k_p = jax.random.split(key)

    N, Cin, Cout, H, W = 2, 4, 8, 16, 16
    x = jax.random.normal(k_x, (N, Cin, H, W), jnp.float32)
    params = _make_params(k_p, Cin, Cout)

    z, skip = downconv_forward(x, params)
    jax.block_until_ready((z, skip))

    z_ref, skip_ref = _ref_forward(x, params)
    np.testing.assert_allclose(np.asarray(skip), np.asarray(skip_ref), rtol=1e-3, atol=1e-3)
    np.testing.assert_allclose(np.asarray(z), np.asarray(z_ref), rtol=1e-3, atol=1e-3)
    assert z.shape == (N, Cout, (H - 2) // 2, (W - 2) // 2)
    assert skip.shape == (N, Cout, H - 2, W - 2)

    print("KERNEL_OK")
</pallas_src>

<mosaic_0001>
module attributes {stable_mosaic.version = 11 : i64} {
  func.func @_downconv_kernel(%arg0: i32, %arg1: memref<1x8x512xf32, #tpu.memory_space<vmem>>, %arg2: memref<16x72xf32, #tpu.memory_space<vmem>>, %arg3: memref<8x72xf32, #tpu.memory_space<vmem>>, %arg4: memref<8x3xf32, #tpu.memory_space<vmem>>, %arg5: memref<1x290xf32, #tpu.memory_space<vmem>>, %arg6: memref<1x8x256xf32, #tpu.memory_space<vmem>>, %arg7: memref<1x8x256xf32, #tpu.memory_space<vmem>>) attributes {dimension_semantics = [#tpu.dimension_semantics<parallel>], iteration_bounds = array<i64: 2>, scalar_prefetch = 0 : i64, scratch_operands = 0 : i64, tpu.core_type = #tpu.core_type<tc>, window_params = [{transform_indices = @transform_0, window_bounds = array<i64: 1, 8, 512>}, {pipeline_mode = #tpu.pipeline_mode<synchronous>, transform_indices = @transform_1, window_bounds = array<i64: 16, 72>}, {pipeline_mode = #tpu.pipeline_mode<synchronous>, transform_indices = @transform_2, window_bounds = array<i64: 8, 72>}, {pipeline_mode = #tpu.pipeline_mode<synchronous>, transform_indices = @transform_3, window_bounds = array<i64: 8, 3>}, {pipeline_mode = #tpu.pipeline_mode<synchronous>, transform_indices = @transform_4, window_bounds = array<i64: 1, 290>}, {transform_indices = @transform_5, window_bounds = array<i64: 1, 8, 256>}, {transform_indices = @transform_6, window_bounds = array<i64: 1, 8, 256>}]} {
    %c0 = arith.constant 0 : index
    %c0_0 = arith.constant 0 : index
    %0 = vector.load %arg4[%c0, %c0_0] : memref<8x3xf32, #tpu.memory_space<vmem>>, vector<8x1xf32>
    %c0_1 = arith.constant 0 : index
    %c1 = arith.constant 1 : index
    %1 = vector.load %arg4[%c0_1, %c1] : memref<8x3xf32, #tpu.memory_space<vmem>>, vector<8x1xf32>
    %c0_2 = arith.constant 0 : index
    %c2 = arith.constant 2 : index
    %2 = vector.load %arg4[%c0_2, %c2] : memref<8x3xf32, #tpu.memory_space<vmem>>, vector<8x1xf32>
    %c0_3 = arith.constant 0 : index
    %c0_4 = arith.constant 0 : index
    %3 = vector.load %arg5[%c0_3, %c0_4] : memref<1x290xf32, #tpu.memory_space<vmem>>, vector<1x290xf32>
    %c0_5 = arith.constant 0 : index
    %c0_6 = arith.constant 0 : index
    %c0_7 = arith.constant 0 : index
    %4 = vector.load %arg1[%c0_5, %c0_6, %c0_7] : memref<1x8x512xf32, #tpu.memory_space<vmem>>, vector<1x8x512xf32>
    %5 = vector.shape_cast %4 : vector<1x8x512xf32> to vector<8x512xf32>
    %6 = vector.extract_strided_slice %5 {offsets = [0, 111], sizes = [8, 290], strides = [1, 1]} : vector<8x512xf32> to vector<8x290xf32>
    %7 = vector.extract_strided_slice %5 {offsets = [0, 112], sizes = [8, 290], strides = [1, 1]} : vector<8x512xf32> to vector<8x290xf32>
    %8 = vector.extract_strided_slice %5 {offsets = [0, 113], sizes = [8, 290], strides = [1, 1]} : vector<8x512xf32> to vector<8x290xf32>
    %9 = vector.extract_strided_slice %5 {offsets = [0, 127], sizes = [8, 290], strides = [1, 1]} : vector<8x512xf32> to vector<8x290xf32>
    %10 = vector.extract_strided_slice %5 {offsets = [0, 128], sizes = [8, 290], strides = [1, 1]} : vector<8x512xf32> to vector<8x290xf32>
    %11 = vector.extract_strided_slice %5 {offsets = [0, 129], sizes = [8, 290], strides = [1, 1]} : vector<8x512xf32> to vector<8x290xf32>
    %12 = vector.extract_strided_slice %5 {offsets = [0, 143], sizes = [8, 290], strides = [1, 1]} : vector<8x512xf32> to vector<8x290xf32>
    %13 = vector.extract_strided_slice %5 {offsets = [0, 144], sizes = [8, 290], strides = [1, 1]} : vector<8x512xf32> to vector<8x290xf32>
    %14 = vector.extract_strided_slice %5 {offsets = [0, 145], sizes = [8, 290], strides = [1, 1]} : vector<8x512xf32> to vector<8x290xf32>
    %15 = tpu.concatenate %6, %7, %8, %9, %10, %11, %12, %13, %14 in 0 : vector<8x290xf32>, vector<8x290xf32>, vector<8x290xf32>, vector<8x290xf32>, vector<8x290xf32>, vector<8x290xf32>, vector<8x290xf32>, vector<8x290xf32>, vector<8x290xf32> -> vector<72x290xf32>
    %c0_8 = arith.constant 0 : index
    %c0_9 = arith.constant 0 : index
    %16 = vector.load %arg2[%c0_8, %c0_9] : memref<16x72xf32, #tpu.memory_space<vmem>>, vector<16x72xf32>
    %cst = arith.constant dense<0.000000e+00> : vector<16x290xf32>
    %17 = tpu.matmul %16, %15, %cst {dimension_numbers = #tpu.dot_dimension_numbers<[1], [0], [0], [1], [0, 0, 1, 1], [], []>} : vector<16x72xf32>, vector<72x290xf32>, vector<16x290xf32> -> vector<16x290xf32>
    %18 = vector.extract_strided_slice %17 {offsets = [0, 0], sizes = [8, 290], strides = [1, 1]} : vector<16x290xf32> to vector<8x290xf32>
    %19 = vector.broadcast %0 : vector<8x1xf32> to vector<8x290xf32>
    %20 = arith.addf %18, %19 : vector<8x290xf32>
    %cst_10 = arith.constant 0.000000e+00 : f32
    %21 = vector.broadcast %cst_10 : f32 to vector<8x290xf32>
    %22 = arith.maximumf %20, %21 : vector<8x290xf32>
    %23 = vector.broadcast %3 : vector<1x290xf32> to vector<8x290xf32>
    %24 = arith.mulf %22, %23 : vector<8x290xf32>
    %25 = vector.extract_strided_slice %24 {offsets = [0, 0], sizes = [8, 256], strides = [1, 1]} : vector<8x290xf32> to vector<8x256xf32>
    %26 = vector.extract_strided_slice %24 {offsets = [0, 1], sizes = [8, 256], strides = [1, 1]} : vector<8x290xf32> to vector<8x256xf32>
    %27 = vector.extract_strided_slice %24 {offsets = [0, 2], sizes = [8, 256], strides = [1, 1]} : vector<8x290xf32> to vector<8x256xf32>
    %28 = vector.extract_strided_slice %24 {offsets = [0, 16], sizes = [8, 256], strides = [1, 1]} : vector<8x290xf32> to vector<8x256xf32>
    %29 = vector.extract_strided_slice %24 {offsets = [0, 17], sizes = [8, 256], strides = [1, 1]} : vector<8x290xf32> to vector<8x256xf32>
    %30 = vector.extract_strided_slice %24 {offsets = [0, 18], sizes = [8, 256], strides = [1, 1]} : vector<8x290xf32> to vector<8x256xf32>
    %31 = vector.extract_strided_slice %24 {offsets = [0, 32], sizes = [8, 256], strides = [1, 1]} : vector<8x290xf32> to vector<8x256xf32>
    %32 = vector.extract_strided_slice %24 {offsets = [0, 33], sizes = [8, 256], strides = [1, 1]} : vector<8x290xf32> to vector<8x256xf32>
    %33 = vector.extract_strided_slice %24 {offsets = [0, 34], sizes = [8, 256], strides = [1, 1]} : vector<8x290xf32> to vector<8x256xf32>
    %34 = tpu.concatenate %25, %26, %27, %28, %29, %30, %31, %32, %33 in 0 : vector<8x256xf32>, vector<8x256xf32>, vector<8x256xf32>, vector<8x256xf32>, vector<8x256xf32>, vector<8x256xf32>, vector<8x256xf32>, vector<8x256xf32>, vector<8x256xf32> -> vector<72x256xf32>
    %c0_11 = arith.constant 0 : index
    %c0_12 = arith.constant 0 : index
    %35 = vector.load %arg3[%c0_11, %c0_12] : memref<8x72xf32, #tpu.memory_space<vmem>>, vector<8x72xf32>
    %cst_13 = arith.constant dense<0.000000e+00> : vector<8x256xf32>
    %36 = tpu.matmul %35, %34, %cst_13 {dimension_numbers = #tpu.dot_dimension_numbers<[1], [0], [0], [1], [0, 0, 1, 1], [], []>} : vector<8x72xf32>, vector<72x256xf32>, vector<8x256xf32> -> vector<8x256xf32>
    %37 = vector.extract_strided_slice %17 {offsets = [8, 0], sizes = [8, 256], strides = [1, 1]} : vector<16x290xf32> to vector<8x256xf32>
    %38 = vector.broadcast %1 : vector<8x1xf32> to vector<8x256xf32>
    %39 = arith.addf %36, %38 : vector<8x256xf32>
    %cst_14 = arith.constant 0.000000e+00 : f32
    %40 = vector.broadcast %cst_14 : f32 to vector<8x256xf32>
    %41 = arith.maximumf %39, %40 : vector<8x256xf32>
    %42 = arith.addf %41, %37 : vector<8x256xf32>
    %43 = vector.broadcast %2 : vector<8x1xf32> to vector<8x256xf32>
    %44 = arith.addf %42, %43 : vector<8x256xf32>
    %c0_15 = arith.constant 0 : index
    %c0_16 = arith.constant 0 : index
    %c0_17 = arith.constant 0 : index
    %45 = vector.load %arg6[%c0_15, %c0_16, %c0_17] : memref<1x8x256xf32, #tpu.memory_space<vmem>>, vector<1x8x256xf32>
    %46 = vector.shape_cast %45 : vector<1x8x256xf32> to vector<8x256xf32>
    %47 = vector.shape_cast %44 : vector<8x256xf32> to vector<1x8x256xf32>
    tpu.vector_store %arg6[%c0_15, %c0_16, %c0_17], %47 {strides = array<i32>} : memref<1x8x256xf32, #tpu.memory_space<vmem>>, vector<1x8x256xf32>,
    %48 = vector.extract_strided_slice %44 {offsets = [0, 0], sizes = [8, 207], strides = [1, 1]} : vector<8x256xf32> to vector<8x207xf32>
    %49 = vector.extract_strided_slice %44 {offsets = [0, 1], sizes = [8, 207], strides = [1, 1]} : vector<8x256xf32> to vector<8x207xf32>
    %50 = arith.maximumf %48, %49 : vector<8x207xf32>
    %51 = vector.extract_strided_slice %44 {offsets = [0, 16], sizes = [8, 207], strides = [1, 1]} : vector<8x256xf32> to vector<8x207xf32>
    %52 = vector.extract_strided_slice %44 {offsets = [0, 17], sizes = [8, 207], strides = [1, 1]} : vector<8x256xf32> to vector<8x207xf32>
    %53 = arith.maximumf %51, %52 : vector<8x207xf32>
    %54 = arith.maximumf %50, %53 : vector<8x207xf32>
    %cst_18 = arith.constant 0.000000e+00 : f32
    %55 = vector.broadcast %cst_18 : f32 to vector<8x49xf32>
    %56 = tpu.concatenate %54, %55 in 1 : vector<8x207xf32>, vector<8x49xf32> -> vector<8x256xf32>
    %c0_19 = arith.constant 0 : index
    %c0_20 = arith.constant 0 : index
    %c0_21 = arith.constant 0 : index
    %57 = vector.load %arg7[%c0_19, %c0_20, %c0_21] : memref<1x8x256xf32, #tpu.memory_space<vmem>>, vector<1x8x256xf32>
    %58 = vector.shape_cast %57 : vector<1x8x256xf32> to vector<8x256xf32>
    %59 = vector.shape_cast %56 : vector<8x256xf32> to vector<1x8x256xf32>
    tpu.vector_store %arg7[%c0_19, %c0_20, %c0_21], %59 {strides = array<i32>} : memref<1x8x256xf32, #tpu.memory_space<vmem>>, vector<1x8x256xf32>,
    return
  }
  func.func @transform_0(%arg0: i32) -> (i32, i32, i32) {
    %c0_i32 = arith.constant 0 : i32
    %c0_i32_0 = arith.constant 0 : i32
    %c0_i32_1 = arith.constant 0 : i32
    return %arg0, %c0_i32, %c0_i32_0 : i32, i32, i32
  }
  func.func @transform_1(%arg0: i32) -> (i32, i32) {
    %c0_i32 = arith.constant 0 : i32
    %c0_i32_0 = arith.constant 0 : i32
    %c0_i32_1 = arith.constant 0 : i32
    return %c0_i32, %c0_i32_0 : i32, i32
  }
  func.func @transform_2(%arg0: i32) -> (i32, i32) {
    %c0_i32 = arith.constant 0 : i32
    %c0_i32_0 = arith.constant 0 : i32
    %c0_i32_1 = arith.constant 0 : i32
    return %c0_i32, %c0_i32_0 : i32, i32
  }
  func.func @transform_3(%arg0: i32) -> (i32, i32) {
    %c0_i32 = arith.constant 0 : i32
    %c0_i32_0 = arith.constant 0 : i32
    %c0_i32_1 = arith.constant 0 : i32
    return %c0_i32, %c0_i32_0 : i32, i32
  }
  func.func @transform_4(%arg0: i32) -> (i32, i32) {
    %c0_i32 = arith.constant 0 : i32
    %c0_i32_0 = arith.constant 0 : i32
    %c0_i32_1 = arith.constant 0 : i32
    return %c0_i32, %c0_i32_0 : i32, i32
  }
  func.func @transform_5(%arg0: i32) -> (i32, i32, i32) {
    %c0_i32 = arith.constant 0 : i32
    %c0_i32_0 = arith.constant 0 : i32
    %c0_i32_1 = arith.constant 0 : i32
    return %arg0, %c0_i32, %c0_i32_0 : i32, i32, i32
  }
  func.func @transform_6(%arg0: i32) -> (i32, i32, i32) {
    %c0_i32 = arith.constant 0 : i32
    %c0_i32_0 = arith.constant 0 : i32
    %c0_i32_1 = arith.constant 0 : i32
    return %arg0, %c0_i32, %c0_i32_0 : i32, i32, i32
  }
}

</mosaic_0001>

<bundles_post_ra>
// kernel: downconv_forward.1
= control target key start
LH: loop header
LB: loop body
LE: loop exit
PB: predicated region body
PF: predicated region fallthrough
CT: control target
= control target key end

     0   :  { %s1095_s21 = smov 0   ;;  %s1356_s0 = inlined_call_operand.vmem [shape: f32[2,8,512], index: 0, kind: input, shape index: {}]   ;;  %s1357_s1 = inlined_call_operand.vmem [shape: f32[16,72], index: 1, kind: input, shape index: {}]   ;;  %s1358_s2 = inlined_call_operand.vmem [shape: f32[8,72], index: 2, kind: input, shape index: {}]   ;;  %s1359_s3 = inlined_call_operand.vmem [shape: f32[8,3], index: 3, kind: input, shape index: {}]   ;;  %s1360_s4 = inlined_call_operand.vmem [shape: f32[1,290], index: 4, kind: input, shape index: {}]   ;;  %s1361_s5 = inlined_call_operand.vmem [shape: f32[2,8,256], index: 5, kind: output, shape index: {0}]   ;;  %s1362_s6 = inlined_call_operand.vmem [shape: f32[2,8,256], index: 6, kind: output, shape index: {1}]  }
   0x1 LB: > { %s961_s22 = sadd.s32 4294967295, %s1045_s21   ;;  %p965_p0 = scmp.ge.s32.totalorder %s1045_s21, 1  ;;  %s1045_s21 = sphi %s1095_s21, %s17_s21  }
   0x2   : > { %p215_p1 = scmp.lt.s32.totalorder %s1045_s21, 3 }
   0x4   : > { %p216_p2 = pnand %p965_p0, %p215_p1 }
   0x5   : > { %p250_p3 = scmp.lt.s32.totalorder (!%p216_p2), %s961_s22, 1  ;;  %s1047_s27 = smov (!%p216_p2), 94  }
   0x6   : > { %219 = sbr.rel (%p216_p2) target bundleno = 1133 (0x46d), region = 40  ;;  %s1048_s28 = smov (!%p216_p2), 95  }
   0x7   : > { %s1049_s29 = smov (!%p216_p2), 96   ;;  %s1050_s30 = smov (!%p216_p2), 110  }
   0x8   : > { %s1051_s7 = smov (!%p216_p2), 111   ;;  %s1052_s8 = smov (!%p216_p2), 112  }
   0x9   : > { %s1053_s9 = smov (!%p216_p2), 126   ;;  %s1054_s10 = smov (!%p216_p2), 127  }
   0xa   : > { %s1055_s11 = smov (!%p216_p2), 17  }
   0xb   : > { %s1364_s22 = smov (!%p250_p3, %s961_s22), 1  ;;  %vm353_vm0 = vcmask 769024   ;;  %vm344_vm1 = vcmask 777216   ;;  %vm335_vm2 = vcmask 785408   ;;  %vm326_vm3 = vcmask 900096   ;;  %v1203_v49 = vld [vmem:[%s1357_s1] sm:$0xff] }
   0xc   : > { %s979_s23 = sshll.u32 %s1364_s22, 5  ;;  %vm317_vm4 = vcmask 908288   ;;  %vm307_vm5 = vcmask 916480   ;;  %vm295_vm6 = vcmask 1031168   ;;  %vm283_vm7 = vcmask 1039360   ;;  %v1219_v53 = vld [vmem:[%s1359_s3] sm:$0xff] }
   0xd   : > { %s254_s26 = scalar_lea.vmem %s1356_s0, %s979_s23  ;;  %v1056_v48 = vmov 0.0   ;;  %vm485_vm8 = vcmask 588800   ;;  %v1057_v51 = vmov 0   ;;  %vm430_vm9 = vcmask 138240   ;;  %s980_s24 = sshll.u32 %s1364_s22, 4 }
   0xe   : > { %v1109_v0 = vld [vmem:[%s254_s26 + $0x18] sm:$0xff]  ;;  %v268_v1 = vld [vmem:[%s254_s26 + $0x8] sm:$0xff]  ;;  %v269_v2 = vld [vmem:[%s254_s26 + $0x10] sm:$0xff]  ;;  %556 = vmatprep.mubr.f32.mxu0 %v1056_v48  ;;  %1011 = vmatprep.mubr.msk.f32.mxu1 %vm485_vm8, %v1203_v49  ;;  %vm869_vm10 = vcmask 646144  }
   0xf   : > { %351 = vrot.lane.b32.xlu1 %v1109_v0, %s1047_s27  ;;  %347 = vrot.lane.b32.xlu0 %v268_v1, %s1047_s27  ;;  %v1135_v3 = vld [vmem:[%s254_s26] sm:$0xff] }
  0x10   : > { %1035 = vset.pattern.permute.xlu1 %v1057_v51 }
  0x13   : > { %338 = vrot.lane.b32.xlu1 %v268_v1, %s1048_s28  ;;  %349 = vrot.lane.b32.xlu0 %v269_v2, %s1047_s27 }
  0x17   : > { %342 = vrot.lane.b32.xlu1 %v1109_v0, %s1048_s28  ;;  %340 = vrot.lane.b32.xlu0 %v269_v2, %s1048_s28 }
  0x1b   : > { %331 = vrot.lane.b32.xlu1 %v269_v2, %s1049_s29  ;;  %329 = vrot.lane.b32.xlu0 %v268_v1, %s1049_s29 }
  0x1f   : > { %320 = vrot.lane.b32.xlu1 %v268_v1, %s1050_s30  ;;  %333 = vrot.lane.b32.xlu0 %v1109_v0, %s1049_s29 }
  0x23   : > { %324 = vrot.lane.b32.xlu1 %v1109_v0, %s1050_s30  ;;  %322 = vrot.lane.b32.xlu0 %v269_v2, %s1050_s30 }
  0x27   : > { %313 = vrot.lane.b32.xlu1 %v269_v2, %s1051_s7  ;;  %311 = vrot.lane.b32.xlu0 %v268_v1, %s1051_s7 }
  0x2b   : > { %301 = vrot.lane.b32.xlu1 %v268_v1, %s1052_s8  ;;  %315 = vrot.lane.b32.xlu0 %v1109_v0, %s1051_s7 }
  0x2f   : > { %305 = vrot.lane.b32.xlu1 %v1109_v0, %s1052_s8  ;;  %303 = vrot.lane.b32.xlu0 %v269_v2, %s1052_s8 }
  0x33   : > { %289 = vrot.lane.b32.xlu1 %v268_v1, %s1053_s9  ;;  %299 = vrot.lane.b32.xlu0 %v1135_v3, %s1052_s8 }
  0x37   : > { %293 = vrot.lane.b32.xlu1 %v1109_v0, %s1053_s9  ;;  %291 = vrot.lane.b32.xlu0 %v269_v2, %s1053_s9 }
  0x3b   : > { %277 = vrot.lane.b32.xlu1 %v268_v1, %s1054_s10  ;;  %287 = vrot.lane.b32.xlu0 %v1135_v3, %s1053_s9 }
  0x3f   : > { %281 = vrot.lane.b32.xlu1 %v1109_v0, %s1054_s10  ;;  %279 = vrot.lane.b32.xlu0 %v269_v2, %s1054_s10 }
  0x43   : > { %275 = vrot.lane.b32.xlu0 %v1135_v3, %s1054_s10  ;;  %360 = vrot.lane.b32.xlu1 %v268_v1, %s1055_s11 }
  0x47   : > { %362 = vrot.lane.b32.xlu0 %v269_v2, %s1055_s11 }
  0x81   : > { %v352_v4 = vpop.permute.xlu1 %351  ;;  %v348_v5 = vpop.permute.xlu0 %347 }
  0x82   : > { %428 = vrot.lane.b32.xlu1 %v352_v4, %s1055_s11  ;;  %422 = vrot.lane.b32.xlu0 %v348_v5, %s1055_s11 }
  0x85   : > { %v339_v6 = vpop.permute.xlu1 %338  ;;  %v350_v7 = vpop.permute.xlu0 %349 }
  0x86   : > { %414 = vrot.lane.b32.xlu0 %v339_v6, %s1055_s11  ;;  %v355_v20 = vsel %vm353_vm0, %v350_v7, %v352_v4  ;;  %v354_v34 = vsel %vm353_vm0, %v348_v5, %v350_v7 }
  0x89   : > { %v343_v8 = vpop.permute.xlu1 %342  ;;  %v341_v9 = vpop.permute.xlu0 %340 }
  0x8a   : > { %420 = vrot.lane.b32.xlu1 %v343_v8, %s1055_s11  ;;  %v346_v22 = vsel %vm344_vm1, %v341_v9, %v343_v8  ;;  %v345_v37 = vsel %vm344_vm1, %v339_v6, %v341_v9 }
  0x8d   : > { %v332_v10 = vpop.permute.xlu1 %331  ;;  %v330_v11 = vpop.permute.xlu0 %329 }
  0x8e   : > { %406 = vrot.lane.b32.xlu0 %v330_v11, %s1055_s11  ;;  %v336_v40 = vsel %vm335_vm2, %v330_v11, %v332_v10 }
  0x91   : > { %v321_v12 = vpop.permute.xlu1 %320  ;;  %v334_v13 = vpop.permute.xlu0 %333 }
  0x92   : > { %412 = vrot.lane.b32.xlu1 %v334_v13, %s1055_s11  ;;  %398 = vrot.lane.b32.xlu0 %v321_v12, %s1055_s11  ;;  %v337_v25 = vsel %vm335_vm2, %v332_v10, %v334_v13 }
  0x95   : > { %v325_v14 = vpop.permute.xlu1 %324  ;;  %v323_v15 = vpop.permute.xlu0 %322 }
  0x96   : > { %404 = vrot.lane.b32.xlu1 %v325_v14, %s1055_s11  ;;  %v328_v27 = vsel %vm326_vm3, %v323_v15, %v325_v14  ;;  %v327_v42 = vsel %vm326_vm3, %v321_v12, %v323_v15 }
  0x99   : > { %v314_v16 = vpop.permute.xlu1 %313  ;;  %v312_v17 = vpop.permute.xlu0 %311 }
  0x9a   : > { %390 = vrot.lane.b32.xlu0 %v312_v17, %s1055_s11  ;;  %v318_v45 = vsel %vm317_vm4, %v312_v17, %v314_v16 }
  0x9d   : > { %v302_v18 = vpop.permute.xlu1 %301  ;;  %v316_v19 = vpop.permute.xlu0 %315 }
  0x9e   : > { %396 = vrot.lane.b32.xlu1 %v316_v19, %s1055_s11  ;;  %426 = vrot.lane.b32.xlu0 %v355_v20, %s1055_s11  ;;  %v319_v30 = vsel %vm317_vm4, %v314_v16, %v316_v19 }
  0xa1   : > { %v306_v21 = vpop.permute.xlu1 %305  ;;  %v304_v23 = vpop.permute.xlu0 %303 }
  0xa2   : > { %388 = vrot.lane.b32.xlu1 %v306_v21, %s1055_s11  ;;  %418 = vrot.lane.b32.xlu0 %v346_v22, %s1055_s11  ;;  %v310_v33 = vsel %vm307_vm5, %v304_v23, %v306_v21  ;;  %v309_v47 = vsel %vm307_vm5, %v302_v18, %v304_v23 }
  0xa5   : > { %v290_v24 = vpop.permute.xlu1 %289  ;;  %v300_v28 = vpop.permute.xlu0 %299 }
  0xa6   : > { %410 = vrot.lane.b32.xlu0 %v337_v25, %s1055_s11  ;;  %v308_v35 = vsel %vm307_vm5, %v300_v28, %v302_v18 }
  0xa9   : > { %v294_v26 = vpop.permute.xlu1 %293  ;;  %v292_v31 = vpop.permute.xlu0 %291 }
  0xaa   : > { %380 = vrot.lane.b32.xlu1 %v294_v26, %s1055_s11  ;;  %402 = vrot.lane.b32.xlu0 %v328_v27, %s1055_s11  ;;  %v298_v38 = vsel %vm295_vm6, %v292_v31, %v294_v26  ;;  %v297_v50 = vsel %vm295_vm6, %v290_v24, %v292_v31 }
  0xad   : > { %v278_v29 = vpop.permute.xlu1 %277  ;;  %v288_v36 = vpop.permute.xlu0 %287 }
  0xae   : > { %394 = vrot.lane.b32.xlu0 %v319_v30, %s1055_s11  ;;  %v296_v41 = vsel %vm295_vm6, %v288_v36, %v290_v24 }
  0xb1   : > { %v282_v32 = vpop.permute.xlu1 %281  ;;  %v280_v39 = vpop.permute.xlu0 %279 }
  0xb2   : > { %372 = vrot.lane.b32.xlu1 %v282_v32, %s1055_s11  ;;  %386 = vrot.lane.b32.xlu0 %v310_v33, %s1055_s11  ;;  %v286_v43 = vsel %vm283_vm7, %v280_v39, %v282_v32  ;;  %v285_v52 = vsel %vm283_vm7, %v278_v29, %v280_v39 }
  0xb5   : > { %v276_v44 = vpop.permute.xlu0 %275  ;;  %v1224_v56 = vpop.permute.xlu1 %360 }
  0xb6   : > { %424 = vrot.lane.b32.xlu1 %v354_v34, %s1055_s11  ;;  %382 = vrot.lane.b32.xlu0 %v308_v35, %s1055_s11  ;;  %v284_v46 = vsel %vm283_vm7, %v276_v44, %v278_v29 }
  0xb9   : > { %v1222_v54 = vpop.permute.xlu0 %362 }
  0xba   : > { %416 = vrot.lane.b32.xlu1 %v345_v37, %s1055_s11  ;;  %378 = vrot.lane.b32.xlu0 %v298_v38, %s1055_s11  ;;  %v432_v51 = vsel %vm430_vm9, %v1224_v56, %v1222_v54 }
  0xbe   : > { %408 = vrot.lane.b32.xlu1 %v336_v40, %s1055_s11  ;;  %374 = vrot.lane.b32.xlu0 %v296_v41, %s1055_s11 }
  0xc2   : > { %400 = vrot.lane.b32.xlu1 %v327_v42, %s1055_s11  ;;  %370 = vrot.lane.b32.xlu0 %v286_v43, %s1055_s11 }
  0xc6   : > { %392 = vrot.lane.b32.xlu1 %v318_v45, %s1055_s11  ;;  %366 = vrot.lane.b32.xlu0 %v284_v46, %s1055_s11 }
  0xca   : > { %384 = vrot.lane.b32.xlu1 %v309_v47, %s1055_s11  ;;  %358 = vrot.lane.b32.xlu0 %v1135_v3, %s1055_s11 }
  0xce   : > { %376 = vrot.lane.b32.xlu1 %v297_v50, %s1055_s11 }
  0xd2   : > { %368 = vrot.lane.b32.xlu1 %v285_v52, %s1055_s11 }
  0xd6   : > { %364 = vrot.lane.b32.xlu1 %v1109_v0, %s1055_s11 }
  0xda   : > { %645 = vperm.xlu1 %1035, %v1219_v53  }
  0xf4   : > { %v423_v55 = vpop.permute.xlu0 %422  ;;  %v429_v59 = vpop.permute.xlu1 %428 }
  0xf8   : > { %v415_v57 = vpop.permute.xlu0 %414 }
  0xfc   : > { %v421_v60 = vpop.permute.xlu1 %420 }
 0x100   : > { %v407_v58 = vpop.permute.xlu0 %406 }
 0x104   : > { %v399_v61 = vpop.permute.xlu0 %398  ;;  %v413_v62 = vpop.permute.xlu1 %412 }
 0x108   : > { %v405_v2 = vpop.permute.xlu1 %404 }
 0x10c   : > { %v1226_v63 = vpop.permute.xlu0 %390 }
 0x110   : > { %v427_v0 = vpop.permute.xlu0 %426  ;;  %v397_v5 = vpop.permute.xlu1 %396 }
 0x111   : > { %v457_v1 = vsel %vm430_vm9, %v427_v0, %v429_v59 }
 0x112   : > { %993 = vmatprep.subr.mxu1 %v457_v1 }
 0x113   : > { %994 = vmatpush3.msra.mxu1 %v457_v1 }
 0x114   : > { %v419_v3 = vpop.permute.xlu0 %418  ;;  %v389_v8 = vpop.permute.xlu1 %388 }
 0x115   : > { %v454_v4 = vsel %vm430_vm9, %v419_v3, %v421_v60 }
 0x116   : > { %995 = vmatprep.subr.mxu1 %v454_v4 }
 0x117   : > { %996 = vmatpush3.msra.mxu1 %v454_v4 }
 0x118   : > { %v411_v6 = vpop.permute.xlu0 %410 }
 0x119   : > { %v451_v7 = vsel %vm430_vm9, %v411_v6, %v413_v62 }
 0x11a   : > { %997 = vmatprep.subr.mxu1 %v451_v7 }
 0x11b   : > { %998 = vmatpush3.msra.mxu1 %v451_v7 }
 0x11c   : > { %v403_v9 = vpop.permute.xlu0 %402  ;;  %v381_v11 = vpop.permute.xlu1 %380 }
 0x11d   : > { %v448_v10 = vsel %vm430_vm9, %v403_v9, %v405_v2 }
 0x11e   : > { %999 = vmatprep.subr.mxu1 %v448_v10 }
 0x11f   : > { %1000 = vmatpush3.msra.mxu1 %v448_v10 }
 0x120   : > { %v395_v12 = vpop.permute.xlu0 %394 }
 0x121   : > { %v445_v13 = vsel %vm430_vm9, %v395_v12, %v397_v5 }
 0x122   : > { %1001 = vmatprep.subr.mxu1 %v445_v13 }
 0x123   : > { %1002 = vmatpush3.msra.mxu1 %v445_v13 }
 0x124   : > { %v373_v14 = vpop.permute.xlu1 %372  ;;  %v387_v15 = vpop.permute.xlu0 %386 }
 0x125   : > { %v442_v16 = vsel %vm430_vm9, %v387_v15, %v389_v8 }
 0x126   : > { %1003 = vmatprep.subr.mxu1 %v442_v16 }
 0x127   : > { %1004 = vmatpush3.msra.mxu1 %v442_v16 }
 0x128   : > { %v425_v17 = vpop.permute.xlu1 %424  ;;  %v383_v18 = vpop.permute.xlu0 %382 }
 0x129   : > { %v456_v19 = vsel %vm430_vm9, %v425_v17, %v427_v0  ;;  %v455_v20 = vsel %vm430_vm9, %v423_v55, %v425_v17 }
 0x12a   : > { %506 = vmatprep.subr.mxu0 %v456_v19 }
 0x12b   : > { %507 = vmatpush1.msra.mxu0 %v455_v20 }
 0x12c   : > { %v417_v21 = vpop.permute.xlu1 %416  ;;  %v379_v22 = vpop.permute.xlu0 %378 }
 0x12d   : > { %v453_v23 = vsel %vm430_vm9, %v417_v21, %v419_v3  ;;  %v439_v24 = vsel %vm430_vm9, %v379_v22, %v381_v11  ;;  %v452_v25 = vsel %vm430_vm9, %v415_v57, %v417_v21 }
 0x12e   : > { %508 = vmatprep.subr.mxu0 %v453_v23  ;;  %1005 = vmatprep.subr.mxu1 %v439_v24 }
 0x12f   : > { %509 = vmatpush1.msra.mxu0 %v452_v25  ;;  %1006 = vmatpush3.msra.mxu1 %v439_v24 }
 0x130   : > { %v409_v26 = vpop.permute.xlu1 %408  ;;  %v375_v27 = vpop.permute.xlu0 %374 }
 0x131   : > { %v450_v28 = vsel %vm430_vm9, %v409_v26, %v411_v6  ;;  %v449_v29 = vsel %vm430_vm9, %v407_v58, %v409_v26  ;;  %v357_v58 = vld [vmem:[%s1357_s1 + $0x8] sm:$0xff] }
 0x132   : > { %510 = vmatprep.subr.mxu0 %v450_v28 }
 0x133   : > { %511 = vmatpush1.msra.mxu0 %v449_v29 }
 0x134   : > { %v401_v30 = vpop.permute.xlu1 %400  ;;  %v371_v31 = vpop.permute.xlu0 %370 }
 0x135   : > { %v447_v32 = vsel %vm430_vm9, %v401_v30, %v403_v9  ;;  %v436_v33 = vsel %vm430_vm9, %v371_v31, %v373_v14  ;;  %v446_v34 = vsel %vm430_vm9, %v399_v61, %v401_v30  ;;  %v266_v61 = vld [vmem:[%s1360_s4] sm:$0x7]  ;;  %v1058_v14 = vmov 1  }
 0x136   : > { %512 = vmatprep.subr.mxu0 %v447_v32  ;;  %1007 = vmatprep.subr.mxu1 %v436_v33 }
 0x137   : > { %513 = vmatpush1.msra.mxu0 %v446_v34  ;;  %1008 = vmatpush3.msra.mxu1 %v436_v33 }
 0x138   : > { %v393_v35 = vpop.permute.xlu1 %392  ;;  %v367_v41 = vpop.permute.xlu0 %366  ;;  %1036 = vset.pattern.permute.xlu0 %v1058_v14 }
 0x139   : > { %v444_v36 = vsel %vm430_vm9, %v393_v35, %v395_v12  ;;  %v443_v37 = vsel %vm430_vm9, %v1226_v63, %v393_v35 }
 0x13a   : > { %514 = vmatprep.subr.mxu0 %v444_v36 }
 0x13b   : > { %515 = vmatpush1.msra.mxu0 %v443_v37 }
 0x13c   : > { %v385_v38 = vpop.permute.xlu1 %384  ;;  %v359_v46 = vpop.permute.xlu0 %358 }
 0x13d   : > { %v441_v39 = vsel %vm430_vm9, %v385_v38, %v387_v15  ;;  %v440_v40 = vsel %vm430_vm9, %v383_v18, %v385_v38  ;;  %v431_v55 = vsel %vm430_vm9, %v359_v46, %v1224_v56  ;;  %v655_v56 = vlaneseq }
 0x13e   : > { %516 = vmatprep.subr.mxu0 %v441_v39  ;;  %v1059_v15 = vmov 2  }
 0x13f   : > { %517 = vmatpush1.msra.mxu0 %v440_v40  ;;  %v656_v59 = vshrl.u32 %v655_v56, 7  ;;  %1037 = vset.pattern.permute.xlu1 %v1059_v15 }
 0x140   : > { %v377_v42 = vpop.permute.xlu1 %376 }
 0x141   : > { %v438_v43 = vsel %vm430_vm9, %v377_v42, %v379_v22  ;;  %v437_v44 = vsel %vm430_vm9, %v375_v27, %v377_v42  ;;  %v665_v4 = vsub.s32 2, %v656_v59  ;;  %v661_v7 = vsub.s32 1, %v656_v59 }
 0x142   : > { %518 = vmatprep.subr.mxu0 %v438_v43 }
 0x143   : > { %519 = vmatpush1.msra.mxu0 %v437_v44  ;;  %v666_v9 = vrot.slane %v266_v61, %v665_v4  ;;  %v662_v11 = vrot.slane %v266_v61, %v661_v7 }
 0x144   : > { %v369_v45 = vpop.permute.xlu1 %368 }
 0x145   : > { %v435_v47 = vsel %vm430_vm9, %v369_v45, %v371_v31  ;;  %v434_v50 = vsel %vm430_vm9, %v367_v41, %v369_v45 }
 0x146   : > { %520 = vmatprep.subr.mxu0 %v435_v47 }
 0x147   : > { %521 = vmatpush1.msra.mxu0 %v434_v50 }
 0x148   : > { %v365_v52 = vpop.permute.xlu1 %364  ;;  %522 = vmatprep.subr.mxu0 %v432_v51 }
 0x149   : > { %523 = vmatpush1.msra.mxu0 %v431_v55  ;;  %v433_v57 = vsel %vm430_vm9, %v1222_v54, %v365_v52  ;;  %v657_v54 = vsub.s32 0, %v656_v59  ;;  %v756_v59 = vld [vmem:[%s1358_s2] sm:$0xff] }
 0x14a   : > { %972 = vmatmul.mubr.msk.f32.vlgmr.msra.gmra.mxu0 %vm485_vm8, %v1203_v49  ;;  %1009 = vmatprep.subr.mxu1 %v433_v57 }
 0x14b   : > { %1010 = vmatpush3.msra.mxu1 %v433_v57  ;;  %562 = vmatprep.mubr.f32.mxu0 %v1056_v48  ;;  %v658_v63 = vrot.slane %v266_v61, %v657_v54 }
 0x14c   : > { %1012 = vmatmul.mubr.msk.f32.vlgmr.msra.gmra.mxu1 %vm485_vm8, %v357_v58 }
 0x14e   : > { %973 = vmatmul.mubr.msk.f32.gmra.mxu0 %vm485_vm8, %v357_v58 }
 0x14f   : > { %828 = vmatprep.mubr.f32.mxu0 %v1056_v48 }
 0x155   : > { %v646_v60 = vpop.permute.xlu1 %645 }
 0x20a   : > { %v558_v62 = vpop.f32.mrf.mxu0 }
 0x20b   : > { %v648_v49 = vadd.f32 %v646_v60, %v558_v62 }
 0x20c   : > { %v1013_v0 = vpop.f32.mrf.mxu1  ;;  %v560_v5 = vpop.f32.mrf.mxu0 }
 0x20d   : > { %v651_v1 = vmax.f32 %v648_v49, 0.0  ;;  %v649_v6 = vadd.f32 %v646_v60, %v560_v5 }
 0x20e   : > { %v635_v3 = vpop.f32.mrf.mxu1  ;;  %v564_v54 = vpop.f32.mrf.mxu0 }
 0x20f   : > { %v1272_v2 = vmul.f32 %v658_v63, %v651_v1  ;;  %v650_v48 = vadd.f32 %v646_v60, %v635_v3  ;;  %v652_v10 = vmax.f32 %v649_v6, 0.0 }
 0x210   : > { %v566_v60 = vpop.f32.mrf.mxu0 }
 0x211   : > { %736 = vrot.lane.b32.xlu1 %v1272_v2, %s1048_s28  ;;  %746 = vrot.lane.b32.xlu0 %v1272_v2, %s1047_s27  ;;  %v653_v8 = vmax.f32 %v650_v48, 0.0  ;;  %v1289_v13 = vmul.f32 %v662_v11, %v652_v10 }
 0x213   : > { %v672_v12 = vmul.f32 %v666_v9, %v653_v8 }
 0x215   : > { %716 = vrot.lane.b32.xlu1 %v1272_v2, %s1050_s30  ;;  %726 = vrot.lane.b32.xlu0 %v1272_v2, %s1049_s29 }
 0x219   : > { %696 = vrot.lane.b32.xlu1 %v1272_v2, %s1052_s8  ;;  %706 = vrot.lane.b32.xlu0 %v1272_v2, %s1051_s7 }
 0x21d   : > { %750 = vrot.lane.b32.xlu1 %v672_v12, %s1047_s27  ;;  %686 = vrot.lane.b32.xlu0 %v1272_v2, %s1053_s9 }
 0x221   : > { %738 = vrot.lane.b32.xlu1 %v1289_v13, %s1048_s28  ;;  %748 = vrot.lane.b32.xlu0 %v1289_v13, %s1047_s27  ;;  %s259_s27 = scalar_lea.vmem %s1361_s5, %s980_s24 }
 0x225   : > { %730 = vrot.lane.b32.xlu1 %v672_v12, %s1049_s29  ;;  %740 = vrot.lane.b32.xlu0 %v672_v12, %s1048_s28 }
 0x229   : > { %718 = vrot.lane.b32.xlu1 %v1289_v13, %s1050_s30  ;;  %728 = vrot.lane.b32.xlu0 %v1289_v13, %s1049_s29  ;;  %s264_s29 = scalar_lea.vmem %s1362_s6, %s980_s24 }
 0x22d   : > { %710 = vrot.lane.b32.xlu1 %v672_v12, %s1051_s7  ;;  %720 = vrot.lane.b32.xlu0 %v672_v12, %s1050_s30 }
 0x231   : > { %698 = vrot.lane.b32.xlu1 %v1289_v13, %s1052_s8  ;;  %708 = vrot.lane.b32.xlu0 %v1289_v13, %s1051_s7 }
 0x235   : > { %690 = vrot.lane.b32.xlu1 %v672_v12, %s1053_s9  ;;  %700 = vrot.lane.b32.xlu0 %v672_v12, %s1052_s8 }
 0x239   : > { %678 = vrot.lane.b32.xlu1 %v1289_v13, %s1054_s10  ;;  %688 = vrot.lane.b32.xlu0 %v1289_v13, %s1053_s9 }
 0x23d   : > { %676 = vrot.lane.b32.xlu1 %v1272_v2, %s1054_s10  ;;  %680 = vrot.lane.b32.xlu0 %v672_v12, %s1054_s10 }
 0x241   : > { %758 = vperm.xlu0 %1036, %v1219_v53   ;;  %840 = vperm.xlu1 %1037, %v1219_v53  }
 0x245   : > { %1038 = vset.pattern.permute.xlu0 %v1059_v15 }
 0x283   : > { %v737_v16 = vpop.permute.xlu1 %736  ;;  %v747_v17 = vpop.permute.xlu0 %746 }
 0x287   : > { %v717_v18 = vpop.permute.xlu1 %716  ;;  %v727_v19 = vpop.permute.xlu0 %726 }
 0x28b   : > { %v697_v20 = vpop.permute.xlu1 %696  ;;  %v707_v21 = vpop.permute.xlu0 %706 }
 0x28f   : > { %v751_v22 = vpop.permute.xlu1 %750  ;;  %v687_v23 = vpop.permute.xlu0 %686 }
 0x293   : > { %v739_v24 = vpop.permute.xlu1 %738  ;;  %v749_v25 = vpop.permute.xlu0 %748 }
 0x294   : > { %v752_v26 = vsel %vm353_vm0, %v747_v17, %v749_v25  ;;  %v753_v27 = vsel %vm353_vm0, %v749_v25, %v751_v22  ;;  %v742_v30 = vsel %vm344_vm1, %v737_v16, %v739_v24 }
 0x295   : > { %778 = vmatprep.subr.mxu0 %v753_v27 }
 0x296   : > { %779 = vmatpush1.msra.mxu0 %v752_v26 }
 0x297   : > { %v731_v28 = vpop.permute.xlu1 %730  ;;  %v741_v29 = vpop.permute.xlu0 %740 }
 0x298   : > { %v743_v53 = vsel %vm344_vm1, %v739_v24, %v741_v29 }
 0x299   : > { %780 = vmatprep.subr.mxu0 %v743_v53 }
 0x29a   : > { %781 = vmatpush1.msra.mxu0 %v742_v30 }
 0x29b   : > { %v719_v31 = vpop.permute.xlu1 %718  ;;  %v729_v32 = vpop.permute.xlu0 %728 }
 0x29c   : > { %v732_v33 = vsel %vm335_vm2, %v727_v19, %v729_v32  ;;  %v733_v34 = vsel %vm335_vm2, %v729_v32, %v731_v28  ;;  %v722_v38 = vsel %vm326_vm3, %v717_v18, %v719_v31 }
 0x29d   : > { %782 = vmatprep.subr.mxu0 %v733_v34 }
 0x29e   : > { %783 = vmatpush1.msra.mxu0 %v732_v33 }
 0x29f   : > { %v711_v35 = vpop.permute.xlu1 %710  ;;  %v721_v36 = vpop.permute.xlu0 %720 }
 0x2a0   : > { %v723_v37 = vsel %vm326_vm3, %v719_v31, %v721_v36 }
 0x2a1   : > { %784 = vmatprep.subr.mxu0 %v723_v37 }
 0x2a2   : > { %785 = vmatpush1.msra.mxu0 %v722_v38 }
 0x2a3   : > { %v699_v39 = vpop.permute.xlu1 %698  ;;  %v709_v40 = vpop.permute.xlu0 %708 }
 0x2a4   : > { %v712_v41 = vsel %vm317_vm4, %v707_v21, %v709_v40  ;;  %v713_v42 = vsel %vm317_vm4, %v709_v40, %v711_v35  ;;  %v702_v46 = vsel %vm307_vm5, %v697_v20, %v699_v39 }
 0x2a5   : > { %786 = vmatprep.subr.mxu0 %v713_v42 }
 0x2a6   : > { %787 = vmatpush1.msra.mxu0 %v712_v41 }
 0x2a7   : > { %v691_v43 = vpop.permute.xlu1 %690  ;;  %v701_v44 = vpop.permute.xlu0 %700 }
 0x2a8   : > { %v703_v45 = vsel %vm307_vm5, %v699_v39, %v701_v44 }
 0x2a9   : > { %788 = vmatprep.subr.mxu0 %v703_v45 }
 0x2aa   : > { %789 = vmatpush1.msra.mxu0 %v702_v46 }
 0x2ab   : > { %v679_v47 = vpop.permute.xlu1 %678  ;;  %v689_v50 = vpop.permute.xlu0 %688 }
 0x2ac   : > { %v692_v51 = vsel %vm295_vm6, %v687_v23, %v689_v50  ;;  %v693_v52 = vsel %vm295_vm6, %v689_v50, %v691_v43 }
 0x2ad   : > { %790 = vmatprep.subr.mxu0 %v693_v52 }
 0x2ae   : > { %791 = vmatpush1.msra.mxu0 %v692_v51 }
 0x2af   : > { %v677_v55 = vpop.permute.xlu1 %676  ;;  %v681_v57 = vpop.permute.xlu0 %680 }
 0x2b0   : > { %v682_v58 = vsel %vm283_vm7, %v677_v55, %v679_v47  ;;  %v683_v56 = vsel %vm283_vm7, %v679_v47, %v681_v57 }
 0x2b1   : > { %792 = vmatprep.subr.mxu0 %v683_v56 }
 0x2b2   : > { %793 = vmatpush1.msra.mxu0 %v682_v58 }
 0x2b3   : > { %794 = vmatprep.subr.mxu0 %v1289_v13 }
 0x2b4   : > { %795 = vmatpush1.msra.mxu0 %v1272_v2 }
 0x2b5   : > { %976 = vmatmul.mubr.msk.f32.vlgmr.msra.gmra.mxu0 %vm485_vm8, %v756_v59 }
 0x2bc   : > { %v759_v61 = vpop.permute.xlu0 %758  ;;  %v841_v3 = vpop.permute.xlu1 %840 }
 0x375   : > { %v830_v62 = vpop.f32.mrf.mxu0 }
 0x376   : > { %v831_v49 = vadd.f32 %v830_v62, %v759_v61 }
 0x377   : > { %v832_v63 = vpop.f32.mrf.mxu0 }
 0x378   : > { %v835_v0 = vmax.f32 %v831_v49, 0.0  ;;  %v833_v1 = vadd.f32 %v832_v63, %v759_v61 }
 0x37a   : > { %v837_v48 = vadd.f32 %v835_v0, %v564_v54  ;;  %v836_v4 = vmax.f32 %v833_v1, 0.0 }
 0x37c   : > { %v838_v5 = vadd.f32 %v836_v4, %v566_v60  ;;  %v843_v2 = vadd.f32 %v841_v3, %v837_v48 }
 0x37e   : > { %v844_v6 = vadd.f32 %v841_v3, %v838_v5  ;;  %849 = vrot.lane.b32.xlu1 %v843_v2, %s1054_s10  ;;  %845 = vst [vmem:[%s259_s27] sm:$0xff] %v843_v2 }
 0x380   : > { %851 = vrot.lane.b32.xlu0 %v844_v6, %s1054_s10  ;;  %846 = vst [vmem:[%s259_s27 + $0x8] sm:$0xff] %v844_v6 }
 0x3f0   : > { %v850_v7 = vpop.permute.xlu1 %849 }
 0x3f2   : > { %v852_v8 = vpop.permute.xlu0 %851 }
 0x3f3   : > { %v853_v9 = vsel %vm283_vm7, %v850_v7, %v852_v8  ;;  %v857_v10 = vmax.f32 %v844_v6, %v852_v8 }
 0x3f4   : > { %v856_v11 = vmax.f32 %v843_v2, %v853_v9 }
 0x3f5   : > { %862 = vrot.lane.b32.xlu0 %v857_v10, %s1052_s8 }
 0x3f6   : > { %860 = vrot.lane.b32.xlu1 %v856_v11, %s1052_s8 }
 0x467   : > { %v863_v12 = vpop.permute.xlu0 %862 }
 0x468   : > { %v868_v13 = vmax.f32 %v857_v10, %v863_v12  ;;  %v861_v14 = vpop.permute.xlu1 %860 }
 0x469   : > { %v864_v15 = vsel %vm307_vm5, %v861_v14, %v863_v12 }
 0x46a   : > { %v870_v16 = vsel %vm869_vm10, %v868_v13, 0.0  ;;  %v867_v17 = vmax.f32 %v856_v11, %v864_v15 }
 0x46b   : > { %872 = vst [vmem:[%s264_s29 + $0x8] sm:$0xff] %v870_v16 }
 0x46c   : > { %871 = vst [vmem:[%s264_s29] sm:$0xff] %v867_v17 }
 0x46d PF: > { %s17_s21 = sadd.s32 1, %s1045_s21  }
 0x46e   : > { %p14_p4 = scmp.ge.s32.totalorder %s17_s21, 4  }
 0x470   :  { %16 = sbr.rel (!%p14_p4) target bundleno = 1 (0x1), region = 82 }

</bundles_post_ra>
